<compile_context>
chip_gen: v7x
topology: tpu7x:2x2x1
jax: 0.10.0
libtpu: 0.0.40
codegen_flags: <defaults>
</compile_context>

<pallas_src>
import functools

import jax
import jax.numpy as jnp
from jax.experimental import pallas as pl
from jax.experimental.pallas import tpu as pltpu

NEG_SLOPE = 0.01  # PyTorch F.leaky_relu default


def _focal_conv_kernel(p_ref, w_ref, o_ref, *, neg_slope):
    # p_ref: (tile_rows, W*K) im2col patches (lane-dense)
    # w_ref: (W*K, W*Cout)    block-diagonal weight (resident across grid steps)
    # o_ref: (tile_rows, W*Cout) lane-dense output slab (last dim = 128 here)
    acc = jnp.dot(p_ref[...], w_ref[...],
                  preferred_element_type=jnp.float32)        # (tile_rows, W*Cout)
    o_ref[...] = jnp.where(acc >= 0, acc, neg_slope * acc).astype(o_ref.dtype)


def _pick_row_tile(rows, wk, wc, bytes_per_elem=4, vmem_budget=8 << 20):
    """Rows per grid step. Single step at small sizes; VMEM-bounded tile at scale
    (double-buffered patches + output per tile; weight is resident once)."""
    if rows <= 512:
        return rows
    per_row = (wk + wc) * bytes_per_elem * 2          # double-buffered in + out
    max_rows = max(8, (vmem_budget // per_row) // 8 * 8)
    t = min(rows, max_rows, 1024)
    while rows % t != 0 and t > 8:                    # keep a multiple of 8 that divides rows
        t -= 8
    return t if rows % t == 0 else rows


def focal_conv2d(x_nchw, weight_oihw, halving):
    """FocalConv2d forward.  x_nchw: (N, Cin, H, W); weight: (Cout, Cin, KH, KW)."""
    N, Cin, H, W = x_nchw.shape
    Cout, _, KH, KW = weight_oihw.shape
    ph, pw = KH // 2, KW // 2          # 'same' padding per chunk (padding=1 for k=3)
    G = 2 ** halving                   # number of chunks
    # TODO(synk): torch.split would yield a smaller ragged last chunk when H is
    # not divisible by 2**halving; that case is not supported here.
    assert H % G == 0, "H must be divisible by 2**halving"
    sh = H // G                        # split size along H

    # ---- plain-JAX glue: layout + per-chunk zero padding + im2col ----
    x_nhwc = jnp.transpose(x_nchw, (0, 2, 3, 1))                 # (N, H, W, Cin)
    x_chunks = x_nhwc.reshape(N, G, sh, W, Cin)                  # (N, G, sh, W, Cin)
    x_pad = jnp.pad(x_chunks, ((0, 0), (0, 0), (ph, ph), (pw, pw), (0, 0)))

    taps = []
    for kh in range(KH):               # static: KH*KW slices, built once in XLA
        for kw in range(KW):
            taps.append(x_pad[:, :, kh:kh + sh, kw:kw + W, :])   # (N,G,sh,W,Cin)
    patches = jnp.stack(taps, axis=4)                            # (N,G,sh,W,T,Cin)

    K = KH * KW * Cin                  # 36
    rows = N * G * sh                  # = N * H
    WK = W * K                         # lane dim of patches (576 here)
    WC = W * Cout                      # lane dim of output slab (128 here)
    patches = patches.reshape(rows, WK)                          # (rows, W*K)

    # Weight -> (K, Cout) with row order matching the tap/Cin flattening, then
    # block-diagonal (W*K, W*Cout): W copies of (K, Cout) on the diagonal.
    w_mat = jnp.transpose(weight_oihw, (2, 3, 1, 0)).reshape(K, Cout)
    eye_w = jnp.eye(W, dtype=w_mat.dtype)                        # (W, W)
    w_bd = (eye_w[:, None, :, None] * w_mat[None, :, None, :]).reshape(WK, WC)

    tile_rows = _pick_row_tile(rows, WK, WC)
    grid = (rows // tile_rows,)

    out_slab = pl.pallas_call(
        functools.partial(_focal_conv_kernel, neg_slope=NEG_SLOPE),
        out_shape=jax.ShapeDtypeStruct((rows, WC), jnp.float32),
        grid=grid,
        in_specs=[
            pl.BlockSpec((tile_rows, WK), lambda i: (i, 0)),
            pl.BlockSpec((WK, WC), lambda i: (0, 0)),
        ],
        out_specs=pl.BlockSpec((tile_rows, WC), lambda i: (i, 0)),
        compiler_params=pltpu.CompilerParams(
            dimension_semantics=("parallel",)),
        cost_estimate=pl.CostEstimate(
            flops=2 * rows * WK * WC,
            transcendentals=0,
            bytes_accessed=4 * (rows * WK + WK * WC + rows * WC)),
    )(patches, w_bd)                                             # (N*H, W*Cout)

    # De-interleave lane-dense slab back to NCHW (concat of chunks along H).
    out = out_slab.reshape(N, G, sh, W, Cout)
    out = jnp.transpose(out, (0, 4, 1, 2, 3)).reshape(N, Cout, H, W)
    return out


def _reference(x_nchw, weight_oihw, halving):
    """Pure-JAX reference matching the PyTorch forward."""
    N, Cin, H, W = x_nchw.shape
    Cout, _, KH, KW = weight_oihw.shape
    ph, pw = KH // 2, KW // 2
    sh = H // (2 ** halving)
    outs = []
    for i in range(0, H, sh):
        chunk = x_nchw[:, :, i:i + sh, :]
        outs.append(jax.lax.conv_general_dilated(
            chunk, weight_oihw, window_strides=(1, 1),
            padding=[(ph, ph), (pw, pw)],
            dimension_numbers=("NCHW", "OIHW", "NCHW")))
    z = jnp.concatenate(outs, axis=2)
    return jnp.where(z >= 0, z, NEG_SLOPE * z)


if __name__ == "__main__":
    key = jax.random.PRNGKey(0)
    k_x, k_w = jax.random.split(key)

    # Module config: in_channels=4, out_channels=8, kernel_size=3, halving=2,
    # padding=1 (spatial-preserving conv per chunk), bias=False.
    N, Cin, H, W = 2, 4, 16, 16
    Cout, KH, KW = 8, 3, 3
    halving = 2

    x = jax.random.normal(k_x, (N, Cin, H, W), dtype=jnp.float32)
    # Deterministic synthetic conv weight (PyTorch layout OIHW).
    weight = 0.1 * jax.random.normal(k_w, (Cout, Cin, KH, KW), dtype=jnp.float32)

    out = focal_conv2d(x, weight, halving)
    out = jax.block_until_ready(out)

    ref = _reference(x, weight, halving)
    assert out.shape == (N, Cout, H, W), out.shape
    assert jnp.allclose(out, ref, atol=1e-4, rtol=1e-4), \
        float(jnp.max(jnp.abs(out - ref)))

    print("KERNEL_OK")
</pallas_src>

<mosaic_0001>
module attributes {stable_mosaic.version = 11 : i64} {
  func.func @_focal_conv_kernel(%arg0: i32, %arg1: memref<32x576xf32, #tpu.memory_space<vmem>>, %arg2: memref<576x128xf32, #tpu.memory_space<vmem>>, %arg3: memref<32x128xf32, #tpu.memory_space<vmem>>) attributes {dimension_semantics = [#tpu.dimension_semantics<parallel>], iteration_bounds = array<i64: 1>, scalar_prefetch = 0 : i64, scratch_operands = 0 : i64, tpu.core_type = #tpu.core_type<tc>, window_params = [{transform_indices = @transform_0, window_bounds = array<i64: 32, 576>}, {pipeline_mode = #tpu.pipeline_mode<synchronous>, transform_indices = @transform_1, window_bounds = array<i64: 576, 128>}, {transform_indices = @transform_2, window_bounds = array<i64: 32, 128>}]} {
    %c0 = arith.constant 0 : index
    %c0_0 = arith.constant 0 : index
    %0 = vector.load %arg1[%c0, %c0_0] : memref<32x576xf32, #tpu.memory_space<vmem>>, vector<32x576xf32>
    %c0_1 = arith.constant 0 : index
    %c0_2 = arith.constant 0 : index
    %1 = vector.load %arg2[%c0_1, %c0_2] : memref<576x128xf32, #tpu.memory_space<vmem>>, vector<576x128xf32>
    %cst = arith.constant dense<0.000000e+00> : vector<32x128xf32>
    %2 = tpu.matmul %0, %1, %cst {dimension_numbers = #tpu.dot_dimension_numbers<[1], [0], [0], [1], [0, 0, 1, 1], [], []>} : vector<32x576xf32>, vector<576x128xf32>, vector<32x128xf32> -> vector<32x128xf32>
    %cst_3 = arith.constant 0.000000e+00 : f32
    %3 = vector.broadcast %cst_3 : f32 to vector<32x128xf32>
    %4 = arith.cmpf oge, %2, %3 : vector<32x128xf32>
    %cst_4 = arith.constant 0.00999999977 : f32
    %5 = vector.broadcast %cst_4 : f32 to vector<32x128xf32>
    %6 = arith.mulf %5, %2 : vector<32x128xf32>
    %7 = arith.select %4, %2, %6 : vector<32x128xi1>, vector<32x128xf32>
    %c0_5 = arith.constant 0 : index
    %c0_6 = arith.constant 0 : index
    %8 = vector.load %arg3[%c0_5, %c0_6] : memref<32x128xf32, #tpu.memory_space<vmem>>, vector<32x128xf32>
    tpu.vector_store %arg3[%c0_5, %c0_6], %7 {strides = array<i32>} : memref<32x128xf32, #tpu.memory_space<vmem>>, vector<32x128xf32>,
    return
  }
  func.func @transform_0(%arg0: i32) -> (i32, i32) {
    %c0_i32 = arith.constant 0 : i32
    %c0_i32_0 = arith.constant 0 : i32
    return %arg0, %c0_i32 : i32, i32
  }
  func.func @transform_1(%arg0: i32) -> (i32, i32) {
    %c0_i32 = arith.constant 0 : i32
    %c0_i32_0 = arith.constant 0 : i32
    %c0_i32_1 = arith.constant 0 : i32
    return %c0_i32, %c0_i32_0 : i32, i32
  }
  func.func @transform_2(%arg0: i32) -> (i32, i32) {
    %c0_i32 = arith.constant 0 : i32
    %c0_i32_0 = arith.constant 0 : i32
    return %arg0, %c0_i32 : i32, i32
  }
}

</mosaic_0001>

<bundles_post_ra>
// kernel: tpu_custom_call.1
= control target key start
LH: loop header
LB: loop body
LE: loop exit
PB: predicated region body
PF: predicated region fallthrough
CT: control target
= control target key end

     0   :  { %7 = vsyncpa [#allocation3], 0  ;;  %s791_s0 = inlined_call_operand.hbm [shape: f32[32,576], index: 0, kind: input, shape index: {}]   ;;  %s792_s1 = inlined_call_operand.hbm [shape: f32[576,128], index: 1, kind: input, shape index: {}]   ;;  %s793_s2 = inlined_call_operand.hbm [shape: f32[32,128], index: 2, kind: output, shape index: {}]  }
   0x1   :  { %8 = vsyncpa [#allocation6], 0 }
   0x2   :  { %9 = vsyncpa [#allocation4], 0  ;;  %s727_s9 = smov [#allocation2]   ;;  %s655_s13 = scalar_lea.hbm %s791_s0, 2560 }
   0x3   :  { %s15_s10 = sshll.u32 %s727_s9, 4  ;;  %p656_p0 = scmp.ne.s32.totalorder %s791_s0, %s655_s13  ;;  %s16_s10 = int_to_ptr.vmem [resolvable:$true] %s15_s10 }
   0x4   :  { %p659_p1 = scmp.lt.u32.totalorder %s655_s13, %s791_s0 }
   0x6   :  { %p661_p2 = pnand %p659_p1, %p656_p0 }
   0x8   :  { %664 = shalt.err (!%p661_p2)
}
   0x9   :  { %s665_s18 = scalar_lea.vmem %s16_s10, 2560  ;;  %p670_p4 = scmp.lt.s32.totalorder %s16_s10, %s16_s10 }
   0xa   :  { %p666_p3 = scmp.ne.s32.totalorder %s16_s10, %s665_s18  ;;  %p671_p5 = scmp.lt.s32.totalorder %s665_s18, %s665_s18 }
   0xc   :  { %p672_p6 = por %p671_p5, %p670_p4 }
   0xe   :  { %p673_p7 = pnand %p672_p6, %p666_p3 }
  0x10   :  { %676 = shalt.err (!%p673_p7)
}
  0x11   :  { %s728_s19 = smov 640   ;;  %s729_s20 = smov 40  }
  0x12   :  { %21 = dma.hbm_to_vmem [thread:$0]  %s791_s0, 2560, %s16_s10, [#allocation3], %s728_s19, %s728_s19, %s729_s20  }
  0x13   :  { %s730_s23 = smov [#allocation5]   ;;  %s677_s27 = scalar_lea.hbm %s792_s1, 9216 }
  0x14   :  { %s27_s24 = sshll.u32 %s730_s23, 4  ;;  %p678_p8 = scmp.ne.s32.totalorder %s792_s1, %s677_s27  ;;  %s28_s24 = int_to_ptr.vmem [resolvable:$true] %s27_s24 }
  0x15   :  { %p681_p9 = scmp.lt.u32.totalorder %s677_s27, %s792_s1 }
  0x17   :  { %p683_p10 = pnand %p681_p9, %p678_p8 }
  0x19   :  { %686 = shalt.err (!%p683_p10)
}
  0x1a   :  { %s687_s4 = scalar_lea.vmem %s28_s24, 9216  ;;  %p692_p12 = scmp.lt.s32.totalorder %s28_s24, %s28_s24 }
  0x1b   :  { %p688_p11 = scmp.ne.s32.totalorder %s28_s24, %s687_s4  ;;  %p693_p13 = scmp.lt.s32.totalorder %s687_s4, %s687_s4 }
  0x1d   :  { %p694_p0 = por %p693_p13, %p692_p12 }
  0x1f   :  { %p695_p1 = pnand %p694_p0, %p688_p11 }
  0x21   :  { %698 = shalt.err (!%p695_p1)
}
  0x22   :  { %s731_s0 = smov 128   ;;  %s732_s5 = smov 8  }
  0x23   :  { %33 = dma.hbm_to_vmem [thread:$0]  %s792_s1, 9216, %s28_s24, [#allocation6], %s731_s0, %s731_s0, %s732_s5  }
  0x24   :  { %721 = dma.done.wait [#allocation3], 2560  }
  0x25   :  { %722 = vsyncadd [#allocation3], 4294964736 }
  0x26   :  { %723 = dma.done.wait [#allocation6], 9216  }
  0x27   :  { %724 = vsyncadd [#allocation6], 4294958080  ;;  %v76_v0 = vld [vmem:[#allocation5 + $0x80] sm:$0xff]  ;;  %v77_v1 = vld [vmem:[#allocation5 + $0x88] sm:$0xff]  ;;  %vm132_vm0 = vcmask 523264   ;;  %s733_s1 = smov [#allocation7]  }
  0x28   :  { %v108_v2 = vld [vmem:[#allocation5 + $0x180] sm:$0xff]  ;;  %v560_v3 = vpack.c.bf16 %v77_v1, %v76_v0  ;;  %v109_v4 = vld [vmem:[#allocation5 + $0x188] sm:$0xff]  ;;  %v78_v11 = vld [vmem:[#allocation5 + $0x90] sm:$0xff]  ;;  %s421_s8 = sshll.u32 %s733_s1, 4  ;;  %s422_s8 = int_to_ptr.vmem [resolvable:$true] %s421_s8 }
  0x29   :  { %v60_v5 = vld [vmem:[#allocation5] sm:$0xff]  ;;  %v61_v6 = vld [vmem:[#allocation5 + $0x8] sm:$0xff]  ;;  %v592_v7 = vpack.c.bf16 %v109_v4, %v108_v2  ;;  %v79_v13 = vld [vmem:[#allocation5 + $0x98] sm:$0xff]  ;;  %s699_s9 = scalar_lea.vmem %s422_s8, 512  ;;  %p704_p3 = scmp.lt.s32.totalorder %s422_s8, %s422_s8 }
  0x2a   :  { %v562_v8 = vpack.c.bf16 %v61_v6, %v60_v5  ;;  %v92_v9 = vld [vmem:[#allocation5 + $0x100] sm:$0xff]  ;;  %v93_v10 = vld [vmem:[#allocation5 + $0x108] sm:$0xff]  ;;  %561 = vmatprep.subr.bf16.mxu0 %v560_v3  ;;  %v110_v14 = vld [vmem:[#allocation5 + $0x190] sm:$0xff]  ;;  %v564_v16 = vpack.c.bf16 %v79_v13, %v78_v11  ;;  %p700_p2 = scmp.ne.s32.totalorder %s422_s8, %s699_s9  ;;  %p705_p4 = scmp.lt.s32.totalorder %s699_s9, %s699_s9 }
  0x2b   :  { %v594_v12 = vpack.c.bf16 %v93_v10, %v92_v9  ;;  %v111_v15 = vld [vmem:[#allocation5 + $0x198] sm:$0xff]  ;;  %593 = vmatprep.subr.bf16.mxu1 %v592_v7  ;;  %v62_v18 = vld [vmem:[#allocation5 + $0x10] sm:$0xff]  ;;  %v80_v23 = vld [vmem:[#allocation5 + $0xa0] sm:$0xff] }
  0x2c   :  { %563 = vmatpush3.bf16.msra.mxu0 %v562_v8  ;;  %v596_v17 = vpack.c.bf16 %v111_v15, %v110_v14  ;;  %v63_v19 = vld [vmem:[#allocation5 + $0x18] sm:$0xff]  ;;  %v94_v20 = vld [vmem:[#allocation5 + $0x110] sm:$0xff]  ;;  %v81_v24 = vld [vmem:[#allocation5 + $0xa8] sm:$0xff]  ;;  %p706_p5 = por %p705_p4, %p704_p3 }
  0x2d   :  { %595 = vmatpush3.bf16.msra.mxu1 %v594_v12  ;;  %v566_v21 = vpack.c.bf16 %v63_v19, %v62_v18  ;;  %v95_v22 = vld [vmem:[#allocation5 + $0x118] sm:$0xff]  ;;  %565 = vmatprep.subr.bf16.mxu0 %v564_v16  ;;  %v568_v26 = vpack.c.bf16 %v81_v24, %v80_v23  ;;  %v112_v27 = vld [vmem:[#allocation5 + $0x1a0] sm:$0xff]  ;;  %v113_v28 = vld [vmem:[#allocation5 + $0x1a8] sm:$0xff] }
  0x2e   :  { %597 = vmatprep.subr.bf16.mxu1 %v596_v17  ;;  %v598_v25 = vpack.c.bf16 %v95_v22, %v94_v20  ;;  %v64_v29 = vld [vmem:[#allocation5 + $0x20] sm:$0xff]  ;;  %v600_v30 = vpack.c.bf16 %v113_v28, %v112_v27  ;;  %v65_v31 = vld [vmem:[#allocation5 + $0x28] sm:$0xff]  ;;  %v82_v35 = vld [vmem:[#allocation5 + $0xb0] sm:$0xff]  ;;  %p707_p6 = pnand %p706_p5, %p700_p2 }
  0x2f   :  { %v96_v32 = vld [vmem:[#allocation5 + $0x120] sm:$0xff]  ;;  %v97_v33 = vld [vmem:[#allocation5 + $0x128] sm:$0xff]  ;;  %v570_v34 = vpack.c.bf16 %v65_v31, %v64_v29  ;;  %v83_v36 = vld [vmem:[#allocation5 + $0xb8] sm:$0xff] }
  0x30   :  { %567 = vmatpush3.bf16.msra.mxu0 %v566_v21  ;;  %v114_v37 = vld [vmem:[#allocation5 + $0x1b0] sm:$0xff]  ;;  %v602_v38 = vpack.c.bf16 %v97_v33, %v96_v32  ;;  %v572_v39 = vpack.c.bf16 %v83_v36, %v82_v35  ;;  %v115_v40 = vld [vmem:[#allocation5 + $0x1b8] sm:$0xff]  ;;  %v84_v46 = vld [vmem:[#allocation5 + $0xc0] sm:$0xff] }
  0x31   :  { %599 = vmatpush3.bf16.msra.mxu1 %v598_v25  ;;  %569 = vmatprep.subr.bf16.mxu0 %v568_v26  ;;  %v66_v41 = vld [vmem:[#allocation5 + $0x30] sm:$0xff]  ;;  %v67_v42 = vld [vmem:[#allocation5 + $0x38] sm:$0xff]  ;;  %v604_v43 = vpack.c.bf16 %v115_v40, %v114_v37  ;;  %v85_v47 = vld [vmem:[#allocation5 + $0xc8] sm:$0xff] }
  0x32   :  { %601 = vmatprep.subr.bf16.mxu1 %v600_v30  ;;  %v98_v44 = vld [vmem:[#allocation5 + $0x130] sm:$0xff]  ;;  %v99_v45 = vld [vmem:[#allocation5 + $0x138] sm:$0xff]  ;;  %v116_v48 = vld [vmem:[#allocation5 + $0x1c0] sm:$0xff]  ;;  %v574_v50 = vpack.c.bf16 %v67_v42, %v66_v41  ;;  %v576_v52 = vpack.c.bf16 %v85_v47, %v84_v46 }
  0x33   :  { %v117_v49 = vld [vmem:[#allocation5 + $0x1c8] sm:$0xff]  ;;  %v606_v51 = vpack.c.bf16 %v99_v45, %v98_v44  ;;  %v68_v53 = vld [vmem:[#allocation5 + $0x40] sm:$0xff]  ;;  %v86_v58 = vld [vmem:[#allocation5 + $0xd0] sm:$0xff] }
  0x34   :  { %571 = vmatpush3.bf16.msra.mxu0 %v570_v34  ;;  %v69_v54 = vld [vmem:[#allocation5 + $0x48] sm:$0xff]  ;;  %v100_v55 = vld [vmem:[#allocation5 + $0x140] sm:$0xff]  ;;  %v608_v56 = vpack.c.bf16 %v117_v49, %v116_v48  ;;  %v87_v59 = vld [vmem:[#allocation5 + $0xd8] sm:$0xff] }
  0x35   :  { %603 = vmatpush3.bf16.msra.mxu1 %v602_v38  ;;  %573 = vmatprep.subr.bf16.mxu0 %v572_v39  ;;  %v101_v57 = vld [vmem:[#allocation5 + $0x148] sm:$0xff]  ;;  %v118_v60 = vld [vmem:[#allocation5 + $0x1d0] sm:$0xff]  ;;  %v119_v61 = vld [vmem:[#allocation5 + $0x1d8] sm:$0xff]  ;;  %v578_v62 = vpack.c.bf16 %v69_v54, %v68_v53  ;;  %v580_v0 = vpack.c.bf16 %v87_v59, %v86_v58 }
  0x36   :  { %605 = vmatprep.subr.bf16.mxu1 %v604_v43  ;;  %v610_v63 = vpack.c.bf16 %v101_v57, %v100_v55  ;;  %v70_v1 = vld [vmem:[#allocation5 + $0x50] sm:$0xff]  ;;  %v71_v2 = vld [vmem:[#allocation5 + $0x58] sm:$0xff]  ;;  %v612_v4 = vpack.c.bf16 %v119_v61, %v118_v60  ;;  %v88_v6 = vld [vmem:[#allocation5 + $0xe0] sm:$0xff] }
  0x37   :  { %v102_v3 = vld [vmem:[#allocation5 + $0x150] sm:$0xff]  ;;  %v103_v5 = vld [vmem:[#allocation5 + $0x158] sm:$0xff]  ;;  %v89_v7 = vld [vmem:[#allocation5 + $0xe8] sm:$0xff]  ;;  %v582_v10 = vpack.c.bf16 %v71_v2, %v70_v1 }
  0x38   :  { %575 = vmatpush3.bf16.msra.mxu0 %v574_v50  ;;  %v120_v8 = vld [vmem:[#allocation5 + $0x1e0] sm:$0xff]  ;;  %v121_v9 = vld [vmem:[#allocation5 + $0x1e8] sm:$0xff]  ;;  %v614_v13 = vpack.c.bf16 %v103_v5, %v102_v3  ;;  %v584_v14 = vpack.c.bf16 %v89_v7, %v88_v6  ;;  %v43_v17 = vld [vmem:[#allocation2 + $0x18] sm:$0xff] }
  0x39   :  { %607 = vmatpush3.bf16.msra.mxu1 %v606_v51  ;;  %577 = vmatprep.subr.bf16.mxu0 %v576_v52  ;;  %v72_v11 = vld [vmem:[#allocation5 + $0x60] sm:$0xff]  ;;  %v73_v12 = vld [vmem:[#allocation5 + $0x68] sm:$0xff]  ;;  %v616_v18 = vpack.c.bf16 %v121_v9, %v120_v8  ;;  %v90_v20 = vld [vmem:[#allocation5 + $0xf0] sm:$0xff] }
  0x3a   :  { %609 = vmatprep.subr.bf16.mxu1 %v608_v56  ;;  %v104_v15 = vld [vmem:[#allocation5 + $0x160] sm:$0xff]  ;;  %v41_v16 = vld [vmem:[#allocation2 + $0x8] sm:$0xff]  ;;  %v91_v21 = vld [vmem:[#allocation5 + $0xf8] sm:$0xff]  ;;  %294 = vmatprep.mubr.f32.mxu1 %v43_v17  ;;  %v586_v24 = vpack.c.bf16 %v73_v12, %v72_v11 }
  0x3b   :  { %v105_v19 = vld [vmem:[#allocation5 + $0x168] sm:$0xff]  ;;  %209 = vmatprep.mubr.f32.mxu0 %v41_v16  ;;  %v122_v22 = vld [vmem:[#allocation5 + $0x1f0] sm:$0xff]  ;;  %v123_v23 = vld [vmem:[#allocation5 + $0x1f8] sm:$0xff]  ;;  %v588_v26 = vpack.c.bf16 %v91_v21, %v90_v20 }
  0x3c   :  { %579 = vmatpush3.bf16.msra.mxu0 %v578_v62  ;;  %v618_v25 = vpack.c.bf16 %v105_v19, %v104_v15  ;;  %v74_v27 = vld [vmem:[#allocation5 + $0x70] sm:$0xff]  ;;  %v75_v28 = vld [vmem:[#allocation5 + $0x78] sm:$0xff]  ;;  %v620_v30 = vpack.c.bf16 %v123_v23, %v122_v22  ;;  %v124_v32 = vld [vmem:[#allocation5 + $0x200] sm:$0xff] }
  0x3d   :  { %611 = vmatpush3.bf16.msra.mxu1 %v610_v63  ;;  %581 = vmatprep.subr.bf16.mxu0 %v580_v0  ;;  %v106_v29 = vld [vmem:[#allocation5 + $0x170] sm:$0xff]  ;;  %v107_v31 = vld [vmem:[#allocation5 + $0x178] sm:$0xff]  ;;  %v125_v33 = vld [vmem:[#allocation5 + $0x208] sm:$0xff]  ;;  %v590_v34 = vpack.c.bf16 %v75_v28, %v74_v27 }
  0x3e   :  { %613 = vmatprep.subr.bf16.mxu1 %v612_v4  ;;  %v622_v35 = vpack.c.bf16 %v107_v31, %v106_v29  ;;  %v624_v36 = vpack.c.bf16 %v125_v33, %v124_v32  ;;  %v126_v37 = vld [vmem:[#allocation5 + $0x210] sm:$0xff]  ;;  %v127_v38 = vld [vmem:[#allocation5 + $0x218] sm:$0xff]  ;;  %v40_v39 = vld [vmem:[#allocation2] sm:$0xff] }
  0x3f   :  { %v42_v40 = vld [vmem:[#allocation2 + $0x10] sm:$0xff]  ;;  %v628_v42 = vpack.c.bf16 %v127_v38, %v126_v37  ;;  %v48_v43 = vld [vmem:[#allocation2 + $0x40] sm:$0xff]  ;;  %v129_v45 = vld [vmem:[#allocation5 + $0x228] sm:$0xff] }
  0x40   :  { %583 = vmatpush3.bf16.msra.mxu0 %v582_v10  ;;  %v46_v41 = vld [vmem:[#allocation2 + $0x30] sm:$0xff]  ;;  %v128_v44 = vld [vmem:[#allocation5 + $0x220] sm:$0xff]  ;;  %v45_v46 = vld [vmem:[#allocation2 + $0x28] sm:$0xff] }
  0x41   :  { %615 = vmatpush3.bf16.msra.mxu1 %v614_v13  ;;  %585 = vmatprep.subr.bf16.mxu0 %v584_v14  ;;  %v47_v47 = vld [vmem:[#allocation2 + $0x38] sm:$0xff]  ;;  %v632_v49 = vpack.c.bf16 %v129_v45, %v128_v44  ;;  %v53_v50 = vld [vmem:[#allocation2 + $0x68] sm:$0xff]  ;;  %v130_v51 = vld [vmem:[#allocation5 + $0x230] sm:$0xff] }
  0x42   :  { %617 = vmatprep.subr.bf16.mxu1 %v616_v18  ;;  %v51_v48 = vld [vmem:[#allocation2 + $0x58] sm:$0xff]  ;;  %v50_v53 = vld [vmem:[#allocation2 + $0x50] sm:$0xff]  ;;  %v52_v54 = vld [vmem:[#allocation2 + $0x60] sm:$0xff] }
  0x43   :  { %v131_v52 = vld [vmem:[#allocation5 + $0x238] sm:$0xff]  ;;  %v56_v55 = vld [vmem:[#allocation2 + $0x80] sm:$0xff]  ;;  %v58_v57 = vld [vmem:[#allocation2 + $0x90] sm:$0xff] }
  0x44   :  { %587 = vmatpush3.bf16.msra.mxu0 %v586_v24  ;;  %v636_v56 = vpack.c.bf16 %v131_v52, %v130_v51  ;;  %v55_v58 = vld [vmem:[#allocation2 + $0x78] sm:$0xff]  ;;  %v57_v59 = vld [vmem:[#allocation2 + $0x88] sm:$0xff]  ;;  %v44_v60 = vld [vmem:[#allocation2 + $0x20] sm:$0xff] }
  0x45   :  { %619 = vmatpush3.bf16.msra.mxu1 %v618_v25  ;;  %589 = vmatprep.subr.bf16.mxu0 %v588_v26  ;;  %v54_v61 = vld [vmem:[#allocation2 + $0x70] sm:$0xff]  ;;  %v49_v62 = vld [vmem:[#allocation2 + $0x48] sm:$0xff]  ;;  %v59_v63 = vld [vmem:[#allocation2 + $0x98] sm:$0xff] }
  0x46   :  { %621 = vmatprep.subr.bf16.mxu1 %v620_v30 }
  0x48   :  { %591 = vmatpush3.bf16.msra.mxu0 %v590_v34 }
  0x49   :  { %623 = vmatpush3.bf16.msra.mxu1 %v622_v35  ;;  %625 = vmatprep.subr.bf16.mxu0 %v624_v36 }
  0x4a   :  { %640 = vmatprep.subr.bf16.mxu1 %v624_v36 }
  0x4b   :  { %210 = vmatmul.mubr.f32.vlgmr.msra.gmra.mrb[0].mxu0 %v40_v39 }
  0x4c   :  { %295 = vmatmul.mubr.f32.vlgmr.msra.gmra.mrb[0].mxu1 %v42_v40  ;;  %627 = vmatpush3.bf16.msra.mxu0 %v624_v36 }
  0x4d   :  { %644 = vmatpush3.bf16.msra.mxu1 %v624_v36  ;;  %214 = vmatprep.mubr.f32.mxu0 %v46_v41 }
  0x4e   :  { %299 = vmatprep.mubr.f32.mxu1 %v48_v43  ;;  %629 = vmatprep.subr.bf16.mxu0 %v628_v42 }
  0x4f   :  { %215 = vmatmul.mubr.f32.gmra.mrb[2].mxu0 %v45_v46  ;;  %641 = vmatprep.subr.bf16.mxu1 %v628_v42 }
  0x50   :  { %300 = vmatmul.mubr.f32.gmra.mrb[2].mxu1 %v47_v47  ;;  %631 = vmatpush3.bf16.msra.mxu0 %v628_v42 }
  0x51   :  { %645 = vmatpush3.bf16.msra.mxu1 %v628_v42  ;;  %219 = vmatprep.mubr.f32.mxu0 %v51_v48 }
  0x52   :  { %304 = vmatprep.mubr.f32.mxu1 %v53_v50  ;;  %633 = vmatprep.subr.bf16.mxu0 %v632_v49 }
  0x53   :  { %220 = vmatmul.mubr.f32.gmra.mrb[4].mxu0 %v50_v53  ;;  %642 = vmatprep.subr.bf16.mxu1 %v632_v49 }
  0x54   :  { %305 = vmatmul.mubr.f32.gmra.mrb[4].mxu1 %v52_v54  ;;  %635 = vmatpush3.bf16.msra.mxu0 %v632_v49 }
  0x55   :  { %646 = vmatpush3.bf16.msra.mxu1 %v632_v49  ;;  %224 = vmatprep.mubr.f32.mxu0 %v56_v55 }
  0x56   :  { %309 = vmatprep.mubr.f32.mxu1 %v58_v57  ;;  %637 = vmatprep.subr.bf16.mxu0 %v636_v56 }
  0x57   :  { %225 = vmatmul.mubr.f32.gmra.mrb[6].mxu0 %v55_v58  ;;  %643 = vmatprep.subr.bf16.mxu1 %v636_v56 }
  0x58   :  { %310 = vmatmul.mubr.f32.gmra.mrb[6].mxu1 %v57_v59  ;;  %639 = vmatpush3.bf16.msra.mxu0 %v636_v56 }
  0x59   :  { %647 = vmatpush3.bf16.msra.mxu1 %v636_v56  ;;  %554 = vmatprep.mubr.msk.f32.mxu0 %vm132_vm0, %v44_v60 }
  0x5a   :  { %557 = vmatprep.mubr.msk.f32.mxu1 %vm132_vm0, %v54_v61 }
  0x5b   :  { %555 = vmatmul.mubr.msk.f32.vlgmr.msra.gmra.mrb[8].mxu0 %vm132_vm0, %v49_v62 }
  0x5c   :  { %558 = vmatmul.mubr.msk.f32.vlgmr.msra.gmra.mrb[8].mxu1 %vm132_vm0, %v59_v63 }
 0x11e   :  { %v470_v0 = vpop.f32.mrb[0].mxu0 }
 0x11f   :  { %v514_v1 = vpop.f32.mrb[0].mxu1  ;;  %v471_v2 = vpop.f32.mrb[1].mxu0 }
 0x120   :  { %v472_v3 = vadd.f32 %v471_v2, %v470_v0  ;;  %v515_v4 = vpop.f32.mrb[1].mxu1 }
 0x121   :  { %v516_v5 = vadd.f32 %v515_v4, %v514_v1 }
 0x122   :  { %v473_v6 = vpop.f32.mrb[2].mxu0 }
 0x123   :  { %v517_v7 = vpop.f32.mrb[2].mxu1  ;;  %v474_v8 = vpop.f32.mrb[3].mxu0  ;;  %v297_v9 = vadd.f32 %v516_v5, %v472_v3 }
 0x124   :  { %v475_v10 = vadd.f32 %v474_v8, %v473_v6  ;;  %v518_v11 = vpop.f32.mrb[3].mxu1 }
 0x125   :  { %v519_v12 = vadd.f32 %v518_v11, %v517_v7 }
 0x126   :  { %v476_v13 = vpop.f32.mrb[4].mxu0 }
 0x127   :  { %v520_v14 = vpop.f32.mrb[4].mxu1  ;;  %v477_v15 = vpop.f32.mrb[5].mxu0  ;;  %v302_v16 = vadd.f32 %v519_v12, %v475_v10 }
 0x128   :  { %v478_v17 = vadd.f32 %v477_v15, %v476_v13  ;;  %v521_v18 = vpop.f32.mrb[5].mxu1 }
 0x129   :  { %v522_v19 = vadd.f32 %v521_v18, %v520_v14 }
 0x12a   :  { %v479_v20 = vpop.f32.mrb[6].mxu0 }
 0x12b   :  { %v523_v21 = vpop.f32.mrb[6].mxu1  ;;  %v480_v22 = vpop.f32.mrb[7].mxu0  ;;  %v307_v23 = vadd.f32 %v522_v19, %v478_v17 }
 0x12c   :  { %v481_v24 = vadd.f32 %v480_v22, %v479_v20  ;;  %v524_v25 = vpop.f32.mrb[7].mxu1 }
 0x12d   :  { %v525_v26 = vadd.f32 %v524_v25, %v523_v21 }
 0x12e   :  { %v556_v27 = vpop.f32.mrb[8].mxu0 }
 0x12f   :  { %v387_v28 = vadd.f32 %v556_v27, %v302_v16  ;;  %v312_v29 = vadd.f32 %v525_v26, %v481_v24  ;;  %v559_v30 = vpop.f32.mrb[8].mxu1  ;;  %v381_v31 = vpop.f32.mrb[9].mxu0 }
 0x130   :  { %v382_v32 = vadd.f32 %v381_v31, %v297_v9  ;;  %v391_v33 = vpop.f32.mrb[9].mxu1 }
 0x131   :  { %vm401_vm1 = vcmp.ge.f32.partialorder %v387_v28, 0.0  ;;  %v405_v34 = vmul.f32 0.01, %v387_v28  ;;  %v397_v35 = vadd.f32 %v559_v30, %v312_v29  ;;  %v392_v36 = vadd.f32 %v391_v33, %v307_v23 }
 0x132   :  { %vm400_vm2 = vcmp.ge.f32.partialorder %v382_v32, 0.0  ;;  %v404_v37 = vmul.f32 0.01, %v382_v32 }
 0x133   :  { %v409_v38 = vsel %vm401_vm1, %v387_v28, %v405_v34  ;;  %vm403_vm3 = vcmp.ge.f32.partialorder %v397_v35, 0.0  ;;  %v407_v39 = vmul.f32 0.01, %v397_v35  ;;  %vm402_vm4 = vcmp.ge.f32.partialorder %v392_v36, 0.0 }
 0x134   :  { %413 = vst [vmem:[#allocation7 + $0x8] sm:$0xff] %v409_v38  ;;  %v408_v40 = vsel %vm400_vm2, %v382_v32, %v404_v37  ;;  %v406_v41 = vmul.f32 0.01, %v392_v36 }
 0x135   :  { %v411_v42 = vsel %vm403_vm3, %v397_v35, %v407_v39  ;;  %412 = vst [vmem:[#allocation7] sm:$0xff] %v408_v40 }
 0x136   :  { %415 = vst [vmem:[#allocation7 + $0x18] sm:$0xff] %v411_v42  ;;  %v410_v43 = vsel %vm402_vm4, %v392_v36, %v406_v41 }
 0x137   :  { %414 = vst [vmem:[#allocation7 + $0x10] sm:$0xff] %v410_v43 }
 0x138   :  { %710 = shalt.err (!%p707_p6)
}
 0x139   :  { %s711_s12 = scalar_lea.hbm %s793_s2, 512 }
 0x13a   :  { %p712_p7 = scmp.ne.s32.totalorder %s793_s2, %s711_s12  ;;  %p715_p8 = scmp.lt.u32.totalorder %s711_s12, %s793_s2 }
 0x13c   :  { %p717_p9 = pnand %p715_p8, %p712_p7 }
 0x13e   :  { %720 = shalt.err (!%p717_p9)
}
 0x13f   :  { %427 = dma.vmem_to_hbm [thread:$0]  %s422_s8, 512, %s793_s2, [#allocation4], %s731_s0, %s731_s0, %s732_s5  }
 0x140   :  { %725 = dma.done.wait [#allocation4], 512  }
 0x141   :  { %726 = vsyncadd [#allocation4], 4294966784 }
 0x142   :  { %431 = vsyncpa [#allocation3], 1 }
 0x143   :  { %432 = vsyncpa [#allocation6], 1 }
 0x144   :  { %433 = vsyncpa [#allocation4], 1 }

</bundles_post_ra>
